<compile_context>
chip_gen: v6e
topology: v6e:2x2x1
jax: 0.10.0
libtpu: 0.0.40
codegen_flags: <defaults>
</compile_context>

<pallas_src>
import functools

import jax
import jax.numpy as jnp
import numpy as np
from jax import lax
from jax.experimental import pallas as pl
from jax.experimental.pallas import tpu as pltpu

IN_CH = 4
OUT_CH = 4            # residual add requires in_ch == out_ch (as used in wave_model)
KSIZE = 3
STRIDE = 1
PAD = 1
SEQ = 16
BATCH = 2
EPS = 1e-5


def resnet1d_block_kernel(x_ref, w_ref, bn_ref, pe_ref, o_ref, *, seq_len, n_ch):
    f32 = jnp.float32
    C = n_ch
    L = seq_len

    x = x_ref[...]                        # (C, N*L)   lane index = n*L + l
    nl = x.shape[-1]

    # Packed constants: bn columns = [s1 | b1 | b2]; w = [w1 tap0..2 | w2 tap0..2].
    bn = bn_ref[...]                      # (C, 3)
    s1 = bn[:, 0:1]
    b1 = bn[:, 1:2]
    b2 = bn[:, 2:3]
    w = w_ref[...]                        # (C, 2*K*C)

    # Boundary masks built in-kernel (one iota + 2 compares), materialized once
    # at (C, N*L) and reused by both convolutions (no per-call re-broadcast).
    pos = lax.broadcasted_iota(jnp.int32, (C, nl), 1) % L
    mlo = pos != 0          # lane has a left neighbour inside its own sequence
    mhi = pos != (L - 1)    # lane has a right neighbour inside its own sequence

    def conv3(h, off):
        # 'same' conv as three accumulating (C,C)@(C,N*L) MXU dots.  The masked
        # rolls realise the per-sequence zero padding and also kill the roll
        # wrap-around across batch boundaries.  No sublane concat / relayout.
        h_m1 = jnp.where(mlo, pltpu.roll(h, shift=1, axis=1), 0.0)       # h[l-1]
        h_p1 = jnp.where(mhi, pltpu.roll(h, shift=nl - 1, axis=1), 0.0)  # h[l+1]
        acc = jnp.dot(w[:, off:off + C], h_m1, preferred_element_type=f32)
        acc = acc + jnp.dot(w[:, off + C:off + 2 * C], h,
                            preferred_element_type=f32)
        acc = acc + jnp.dot(w[:, off + 2 * C:off + 3 * C], h_p1,
                            preferred_element_type=f32)
        return acc

    # BN1 (folded affine) + ReLU.  Dropout(p=0.1) is identity in eval mode.
    h1 = jnp.maximum(x * s1 + b1, 0.0)
    y1 = conv3(h1, 0)                     # conv1 weights carry the folded s2 scale

    # BN2 is just a bias now (scale folded into w1), then ReLU + conv2.
    h2 = jnp.maximum(y1 + b2, 0.0)
    y2 = conv3(h2, 3 * C)

    # MaxPool1d(2,2) on main + identity paths.  Matmul distributes over '+', so
    # sum the pairwise maxima first and pay a single even-lane selection matmul.
    # The roll wrap across batch boundaries only contaminates odd lanes, which
    # the even-lane selector discards -- revisit if stride/odd-L ever change.
    m = (jnp.maximum(y2, pltpu.roll(y2, shift=nl - 1, axis=1))
         + jnp.maximum(x, pltpu.roll(x, shift=nl - 1, axis=1)))
    o_ref[...] = jnp.dot(m, pe_ref[...], preferred_element_type=f32).astype(o_ref.dtype)


def resnet1d_block(x, w1, w2, gamma1, beta1, mean1, var1, gamma2, beta2, mean2, var2):
    N, C, L = x.shape
    C_out = w1.shape[0]
    assert w1.shape == (C_out, C, KSIZE) and w2.shape == (C_out, C_out, KSIZE)
    assert C_out == C, "residual add requires in_channels == out_channels"
    assert L % 2 == 0, "MaxPool1d(2,2) path assumes an even sequence length"
    out_len = L // 2
    nl = N * L

    # Fold BatchNorm (eval mode) into per-channel scale/shift.
    inv1 = gamma1 / jnp.sqrt(var1 + EPS)
    inv2 = gamma2 / jnp.sqrt(var2 + EPS)
    s1 = inv1
    b1 = beta1 - mean1 * inv1
    s2 = inv2
    b2 = beta2 - mean2 * inv2

    # Fold BN2's scale into conv1's output channels (conv is linear), so the
    # kernel only needs b2.  Flatten weights tap-major and pack both convs
    # into a single constant operand.
    w1s = w1 * s2[:, None, None]
    w1_taps = jnp.transpose(w1s, (0, 2, 1)).reshape(C_out, KSIZE * C)
    w2_taps = jnp.transpose(w2, (0, 2, 1)).reshape(C_out, KSIZE * C_out)
    w_packed = jnp.concatenate([w1_taps, w2_taps], axis=1)       # (C, 2*K*C)

    bn_packed = jnp.stack([s1, b1, b2], axis=1)                  # (C, 3)

    # Even-lane selection matrix for the stride-2 pool (one matmul for both
    # paths).  Built once on the host.
    lane = np.arange(nl)
    p_even = jnp.asarray(
        (lane[:, None] == 2 * np.arange(nl // 2)[None, :]).astype(np.float32))

    # Present the whole batch as a single (C, N*L) slab (channels on sublanes,
    # batch*length on lanes); layout plumbing stays in the wrapper.
    x_cl = jnp.transpose(x, (1, 0, 2)).reshape(C, nl)

    kernel = functools.partial(resnet1d_block_kernel, seq_len=L, n_ch=C)
    out_cl = pl.pallas_call(
        kernel,
        out_shape=jax.ShapeDtypeStruct((C, N * out_len), x.dtype),
    )(x_cl, w_packed, bn_packed, p_even)

    return jnp.transpose(out_cl.reshape(C, N, out_len), (1, 0, 2))


def ref_forward(x, w1, w2, g1, be1, m1, v1, g2, be2, m2, v2):
    """Pure-JAX reference (eval-mode PyTorch semantics)."""
    def bn(h, g, b, m, v):
        return ((h - m[None, :, None]) / jnp.sqrt(v[None, :, None] + EPS)
                * g[None, :, None] + b[None, :, None])

    def conv(h, w):
        return lax.conv_general_dilated(h, w, window_strides=(STRIDE,),
                                        padding=[(PAD, PAD)],
                                        dimension_numbers=('NCH', 'OIH', 'NCH'))

    def maxpool2(h):
        N, C, L = h.shape
        return h.reshape(N, C, L // 2, 2).max(axis=-1)

    out = jax.nn.relu(bn(x, g1, be1, m1, v1))
    out = conv(out, w1)
    out = jax.nn.relu(bn(out, g2, be2, m2, v2))
    out = conv(out, w2)
    return maxpool2(out) + maxpool2(x)


if __name__ == "__main__":
    key = jax.random.PRNGKey(0)
    ks = jax.random.split(key, 12)

    x = jax.random.normal(ks[0], (BATCH, IN_CH, SEQ), jnp.float32)
    w1 = 0.3 * jax.random.normal(ks[1], (OUT_CH, IN_CH, KSIZE), jnp.float32)
    w2 = 0.3 * jax.random.normal(ks[2], (OUT_CH, OUT_CH, KSIZE), jnp.float32)

    gamma1 = 1.0 + 0.1 * jax.random.normal(ks[3], (IN_CH,), jnp.float32)
    beta1 = 0.1 * jax.random.normal(ks[4], (IN_CH,), jnp.float32)
    mean1 = 0.1 * jax.random.normal(ks[5], (IN_CH,), jnp.float32)
    var1 = jnp.abs(jax.random.normal(ks[6], (IN_CH,), jnp.float32)) + 0.5

    gamma2 = 1.0 + 0.1 * jax.random.normal(ks[7], (OUT_CH,), jnp.float32)
    beta2 = 0.1 * jax.random.normal(ks[8], (OUT_CH,), jnp.float32)
    mean2 = 0.1 * jax.random.normal(ks[9], (OUT_CH,), jnp.float32)
    var2 = jnp.abs(jax.random.normal(ks[10], (OUT_CH,), jnp.float32)) + 0.5

    out = resnet1d_block(x, w1, w2, gamma1, beta1, mean1, var1,
                         gamma2, beta2, mean2, var2)
    out = jax.block_until_ready(out)

    ref = ref_forward(x, w1, w2, gamma1, beta1, mean1, var1,
                      gamma2, beta2, mean2, var2)

    assert out.shape == (BATCH, OUT_CH, SEQ // 2), out.shape
    np.testing.assert_allclose(np.asarray(out), np.asarray(ref),
                               rtol=1e-4, atol=1e-4)
    print("KERNEL_OK")
</pallas_src>

<mosaic_0001>
module attributes {stable_mosaic.version = 11 : i64} {
  func.func @resnet1d_block_kernel(%arg0: memref<4x32xf32, #tpu.memory_space<vmem>>, %arg1: memref<4x24xf32, #tpu.memory_space<vmem>>, %arg2: memref<4x3xf32, #tpu.memory_space<vmem>>, %arg3: memref<32x16xf32, #tpu.memory_space<vmem>>, %arg4: memref<4x16xf32, #tpu.memory_space<vmem>>) attributes {dimension_semantics = [], scalar_prefetch = 0 : i64, scratch_operands = 0 : i64, tpu.core_type = #tpu.core_type<tc>} {
    %c0 = arith.constant 0 : index
    %c0_0 = arith.constant 0 : index
    %0 = vector.load %arg0[%c0, %c0_0] : memref<4x32xf32, #tpu.memory_space<vmem>>, vector<4x32xf32>
    %c0_1 = arith.constant 0 : index
    %c0_2 = arith.constant 0 : index
    %1 = vector.load %arg2[%c0_1, %c0_2] : memref<4x3xf32, #tpu.memory_space<vmem>>, vector<4x3xf32>
    %2 = vector.extract_strided_slice %1 {offsets = [0, 0], sizes = [4, 1], strides = [1, 1]} : vector<4x3xf32> to vector<4x1xf32>
    %3 = vector.extract_strided_slice %1 {offsets = [0, 1], sizes = [4, 1], strides = [1, 1]} : vector<4x3xf32> to vector<4x1xf32>
    %4 = vector.extract_strided_slice %1 {offsets = [0, 2], sizes = [4, 1], strides = [1, 1]} : vector<4x3xf32> to vector<4x1xf32>
    %c0_3 = arith.constant 0 : index
    %c0_4 = arith.constant 0 : index
    %5 = vector.load %arg1[%c0_3, %c0_4] : memref<4x24xf32, #tpu.memory_space<vmem>>, vector<4x24xf32>
    %6 = tpu.iota {dimensions = array<i32: 1>} : vector<4x32xi32>
    %c16_i32 = arith.constant 16 : i32
    %c0_i32 = arith.constant 0 : i32
    %7 = arith.cmpi eq, %c16_i32, %c0_i32 : i32
    %c1_i32 = arith.constant 1 : i32
    %8 = arith.select %7, %c1_i32, %c16_i32 : i32
    %9 = vector.broadcast %8 : i32 to vector<4x32xi32>
    %10 = arith.remsi %6, %9 : vector<4x32xi32>
    %c0_i32_5 = arith.constant 0 : i32
    %11 = vector.broadcast %c0_i32_5 : i32 to vector<4x32xi32>
    %12 = arith.cmpi ne, %10, %11 : vector<4x32xi32>
    %c0_i32_6 = arith.constant 0 : i32
    %13 = vector.broadcast %c0_i32_6 : i32 to vector<4x32xi32>
    %14 = arith.cmpi slt, %10, %13 : vector<4x32xi32>
    %c0_i32_7 = arith.constant 0 : i32
    %15 = arith.cmpi slt, %8, %c0_i32_7 : i32
    %16 = vector.broadcast %15 : i1 to vector<4x32xi1>
    %17 = vector.broadcast %16 : vector<4x32xi1> to vector<4x32xi1>
    %18 = arith.xori %14, %17 : vector<4x32xi1>
    %19 = arith.andi %18, %12 : vector<4x32xi1>
    %20 = vector.broadcast %8 : i32 to vector<4x32xi32>
    %21 = arith.addi %10, %20 : vector<4x32xi32>
    %22 = arith.select %19, %21, %10 : vector<4x32xi1>, vector<4x32xi32>
    %c0_i32_8 = arith.constant 0 : i32
    %23 = vector.broadcast %c0_i32_8 : i32 to vector<4x32xi32>
    %24 = arith.cmpi ne, %22, %23 : vector<4x32xi32>
    %c15_i32 = arith.constant 15 : i32
    %25 = vector.broadcast %c15_i32 : i32 to vector<4x32xi32>
    %26 = arith.cmpi ne, %22, %25 : vector<4x32xi32>
    %27 = vector.broadcast %2 : vector<4x1xf32> to vector<4x32xf32>
    %28 = arith.mulf %0, %27 : vector<4x32xf32>
    %29 = vector.broadcast %3 : vector<4x1xf32> to vector<4x32xf32>
    %30 = arith.addf %28, %29 : vector<4x32xf32>
    %cst = arith.constant 0.000000e+00 : f32
    %31 = vector.broadcast %cst : f32 to vector<4x32xf32>
    %32 = arith.maximumf %30, %31 : vector<4x32xf32>
    %c1_i32_9 = arith.constant 1 : i32
    %33 = tpu.dynamic_rotate %32 by %c1_i32_9 dim 1 : vector<4x32xf32>, i32 -> vector<4x32xf32>
    %cst_10 = arith.constant 0.000000e+00 : f32
    %34 = vector.broadcast %cst_10 : f32 to vector<4x32xf32>
    %35 = arith.select %24, %33, %34 : vector<4x32xi1>, vector<4x32xf32>
    %c31_i32 = arith.constant 31 : i32
    %36 = tpu.dynamic_rotate %32 by %c31_i32 dim 1 : vector<4x32xf32>, i32 -> vector<4x32xf32>
    %cst_11 = arith.constant 0.000000e+00 : f32
    %37 = vector.broadcast %cst_11 : f32 to vector<4x32xf32>
    %38 = arith.select %26, %36, %37 : vector<4x32xi1>, vector<4x32xf32>
    %39 = vector.extract_strided_slice %5 {offsets = [0, 0], sizes = [4, 4], strides = [1, 1]} : vector<4x24xf32> to vector<4x4xf32>
    %cst_12 = arith.constant dense<0.000000e+00> : vector<4x32xf32>
    %40 = tpu.matmul %39, %35, %cst_12 {dimension_numbers = #tpu.dot_dimension_numbers<[1], [0], [0], [1], [0, 0, 1, 1], [], []>} : vector<4x4xf32>, vector<4x32xf32>, vector<4x32xf32> -> vector<4x32xf32>
    %41 = vector.extract_strided_slice %5 {offsets = [0, 4], sizes = [4, 4], strides = [1, 1]} : vector<4x24xf32> to vector<4x4xf32>
    %cst_13 = arith.constant dense<0.000000e+00> : vector<4x32xf32>
    %42 = tpu.matmul %41, %32, %cst_13 {dimension_numbers = #tpu.dot_dimension_numbers<[1], [0], [0], [1], [0, 0, 1, 1], [], []>} : vector<4x4xf32>, vector<4x32xf32>, vector<4x32xf32> -> vector<4x32xf32>
    %43 = arith.addf %40, %42 : vector<4x32xf32>
    %44 = vector.extract_strided_slice %5 {offsets = [0, 8], sizes = [4, 4], strides = [1, 1]} : vector<4x24xf32> to vector<4x4xf32>
    %cst_14 = arith.constant dense<0.000000e+00> : vector<4x32xf32>
    %45 = tpu.matmul %44, %38, %cst_14 {dimension_numbers = #tpu.dot_dimension_numbers<[1], [0], [0], [1], [0, 0, 1, 1], [], []>} : vector<4x4xf32>, vector<4x32xf32>, vector<4x32xf32> -> vector<4x32xf32>
    %46 = arith.addf %43, %45 : vector<4x32xf32>
    %47 = vector.broadcast %4 : vector<4x1xf32> to vector<4x32xf32>
    %48 = arith.addf %46, %47 : vector<4x32xf32>
    %cst_15 = arith.constant 0.000000e+00 : f32
    %49 = vector.broadcast %cst_15 : f32 to vector<4x32xf32>
    %50 = arith.maximumf %48, %49 : vector<4x32xf32>
    %c1_i32_16 = arith.constant 1 : i32
    %51 = tpu.dynamic_rotate %50 by %c1_i32_16 dim 1 : vector<4x32xf32>, i32 -> vector<4x32xf32>
    %cst_17 = arith.constant 0.000000e+00 : f32
    %52 = vector.broadcast %cst_17 : f32 to vector<4x32xf32>
    %53 = arith.select %24, %51, %52 : vector<4x32xi1>, vector<4x32xf32>
    %c31_i32_18 = arith.constant 31 : i32
    %54 = tpu.dynamic_rotate %50 by %c31_i32_18 dim 1 : vector<4x32xf32>, i32 -> vector<4x32xf32>
    %cst_19 = arith.constant 0.000000e+00 : f32
    %55 = vector.broadcast %cst_19 : f32 to vector<4x32xf32>
    %56 = arith.select %26, %54, %55 : vector<4x32xi1>, vector<4x32xf32>
    %57 = vector.extract_strided_slice %5 {offsets = [0, 12], sizes = [4, 4], strides = [1, 1]} : vector<4x24xf32> to vector<4x4xf32>
    %cst_20 = arith.constant dense<0.000000e+00> : vector<4x32xf32>
    %58 = tpu.matmul %57, %53, %cst_20 {dimension_numbers = #tpu.dot_dimension_numbers<[1], [0], [0], [1], [0, 0, 1, 1], [], []>} : vector<4x4xf32>, vector<4x32xf32>, vector<4x32xf32> -> vector<4x32xf32>
    %59 = vector.extract_strided_slice %5 {offsets = [0, 16], sizes = [4, 4], strides = [1, 1]} : vector<4x24xf32> to vector<4x4xf32>
    %cst_21 = arith.constant dense<0.000000e+00> : vector<4x32xf32>
    %60 = tpu.matmul %59, %50, %cst_21 {dimension_numbers = #tpu.dot_dimension_numbers<[1], [0], [0], [1], [0, 0, 1, 1], [], []>} : vector<4x4xf32>, vector<4x32xf32>, vector<4x32xf32> -> vector<4x32xf32>
    %61 = arith.addf %58, %60 : vector<4x32xf32>
    %62 = vector.extract_strided_slice %5 {offsets = [0, 20], sizes = [4, 4], strides = [1, 1]} : vector<4x24xf32> to vector<4x4xf32>
    %cst_22 = arith.constant dense<0.000000e+00> : vector<4x32xf32>
    %63 = tpu.matmul %62, %56, %cst_22 {dimension_numbers = #tpu.dot_dimension_numbers<[1], [0], [0], [1], [0, 0, 1, 1], [], []>} : vector<4x4xf32>, vector<4x32xf32>, vector<4x32xf32> -> vector<4x32xf32>
    %64 = arith.addf %61, %63 : vector<4x32xf32>
    %c31_i32_23 = arith.constant 31 : i32
    %65 = tpu.dynamic_rotate %64 by %c31_i32_23 dim 1 : vector<4x32xf32>, i32 -> vector<4x32xf32>
    %66 = arith.maximumf %64, %65 : vector<4x32xf32>
    %c31_i32_24 = arith.constant 31 : i32
    %67 = tpu.dynamic_rotate %0 by %c31_i32_24 dim 1 : vector<4x32xf32>, i32 -> vector<4x32xf32>
    %68 = arith.maximumf %0, %67 : vector<4x32xf32>
    %69 = arith.addf %66, %68 : vector<4x32xf32>
    %c0_25 = arith.constant 0 : index
    %c0_26 = arith.constant 0 : index
    %70 = vector.load %arg3[%c0_25, %c0_26] : memref<32x16xf32, #tpu.memory_space<vmem>>, vector<32x16xf32>
    %cst_27 = arith.constant dense<0.000000e+00> : vector<4x16xf32>
    %71 = tpu.matmul %69, %70, %cst_27 {dimension_numbers = #tpu.dot_dimension_numbers<[1], [0], [0], [1], [0, 0, 1, 1], [], []>} : vector<4x32xf32>, vector<32x16xf32>, vector<4x16xf32> -> vector<4x16xf32>
    %c0_28 = arith.constant 0 : index
    %c0_29 = arith.constant 0 : index
    %72 = vector.load %arg4[%c0_28, %c0_29] : memref<4x16xf32, #tpu.memory_space<vmem>>, vector<4x16xf32>
    tpu.vector_store %arg4[%c0_28, %c0_29], %71 {strides = array<i32>} : memref<4x16xf32, #tpu.memory_space<vmem>>, vector<4x16xf32>,
    return
  }
}

</mosaic_0001>

<bundles_post_ra>
// kernel: tpu_custom_call.1
= control target key start
LH: loop header
LB: loop body
LE: loop exit
PB: predicated region body
PF: predicated region fallthrough
CT: control target
= control target key end

     0   :  { %v779_v1 = vmov 0   ;;  %s931_s0 = inlined_call_operand.vmem [shape: f32[4,32], index: 0, kind: input, shape index: {}]   ;;  %s932_s1 = inlined_call_operand.vmem [shape: f32[4,24], index: 1, kind: input, shape index: {}]   ;;  %s933_s2 = inlined_call_operand.vmem [shape: f32[4,3], index: 2, kind: input, shape index: {}]   ;;  %s934_s3 = inlined_call_operand.vmem [shape: f32[32,16], index: 3, kind: input, shape index: {}]   ;;  %s935_s4 = inlined_call_operand.hbm [shape: f32[4,16], index: 4, kind: output, shape index: {}]  }
   0x1   :  { %v19_v0 = vld [vmem:[%s933_s2] sm:$0xf]  ;;  %753 = vset.pattern.permute.xlu0 %v779_v1 }
   0x2   :  { %9 = vsyncpa [#allocation3], 0  ;;  %39 = vperm.xlu0 %753, %v19_v0   ;;  %v780_v2 = vmov 1   ;;  %v781_v3 = vmov 0.0   ;;  %v826_v5 = vld [vmem:[%s931_s0] sm:$0xf]  ;;  %v21_v17 = vlaneseq }
   0x3   :  { %698 = vmatprep.subr.mxu1 %v781_v3  ;;  %708 = vmatprep.subr.mxu0 %v781_v3  ;;  %vm71_vm0 = vcmask 1043456   ;;  %s782_s2 = smov 32   ;;  %vm783_vm1 = vmmov 0   ;;  %vm49_vm2 = vcmask 1047808   ;;  %v841_v12 = vld [vmem:[%s932_s1] sm:$0xf] }
   0x4   :  { %700 = vmatprep.mubr.msk.f32.mxu1 %vm783_vm1, %v781_v3  ;;  %710 = vmatprep.mubr.msk.f32.mxu0 %vm783_vm1, %v781_v3  ;;  %s784_s20 = smov 124   ;;  %v785_v13 = vmov 2   ;;  %s786_s21 = smov 127   ;;  %vm68_vm3 = vcmask 31744   ;;  %v22_v18 = vand.u32 127, %v21_v17  ;;  %v577_v61 = vld [vmem:[%s934_s3 + $0x18] sm:$0xff] }
   0x5   :  { %755 = vset.pattern.permute.xlu1 %v785_v13  ;;  %s787_s22 = smov 97   ;;  %s788_s1 = smov 120   ;;  %v576_v62 = vld [vmem:[%s934_s3 + $0x10] sm:$0xff]  ;;  %v575_v1 = vld [vmem:[%s934_s3 + $0x8] sm:$0xff]  ;;  %vm578_vm6 = vcmask 261120   ;;  %vm652_vm7 = vcmask 125952  }
   0x6   :  { %754 = vset.pattern.permute.xlu0 %v780_v2  ;;  %v27_v19 = vand.u32 15, %v22_v18  ;;  %s789_s23 = smov 112   ;;  %s790_s24 = smov 116   ;;  %v574_v2 = vld [vmem:[%s934_s3] sm:$0xff] }
   0x7   :  { %44 = vperm.xlu0 %754, %v19_v0   ;;  %s791_s25 = smov 108   ;;  %s792_s8 = smov [#allocation2]  }
   0x8   :  { %vm851_vm4 = vcmp.ne.s32.totalorder %v27_v19, 0  ;;  %vm855_vm5 = vcmp.ne.s32.totalorder %v27_v19, 15  ;;  %s660_s9 = sshll.u32 %s792_s8, 4  ;;  %s661_s9 = int_to_ptr.vmem [resolvable:$true] %s660_s9 }
   0x9   :  { %s757_s3 = scalar_lea.vmem %s661_s9, 64  ;;  %p762_p1 = scmp.lt.s32.totalorder %s661_s9, %s661_s9 }
   0xa   :  { %p758_p0 = scmp.ne.s32.totalorder %s661_s9, %s757_s3  ;;  %p763_p2 = scmp.lt.s32.totalorder %s757_s3, %s757_s3 }
   0xb   :  { %756 = vset.pattern.permute.xlu0 %v785_v13 }
   0xc   :  { %p764_p3 = por %p763_p2, %p762_p1 }
   0xe   :  { %p765_p4 = pnand %p764_p3, %p758_p0 }
  0x7d   :  { %v40_v4 = vpop.permute.xlu0 %39 }
  0x7e   :  { %v42_v6 = vmul.f32 %v40_v4, %v826_v5 }
  0x82   :  { %v45_v7 = vpop.permute.xlu0 %44 }
  0x83   :  { %v47_v8 = vadd.f32 %v45_v7, %v42_v6 }
  0x85   :  { %v48_v9 = vmax.f32 %v47_v8, 0.0 }
  0x87   :  { %50 = vrot.lane.b32.xlu1 %v48_v9, %s782_s2  ;;  %699 = vmatpush3.msk.msra.mxu1 %vm71_vm0, %v48_v9 }
  0x88   :  { %703 = vmatprep.subr.mxu1 %v781_v3 }
  0xf9   :  { %v51_v10 = vpop.permute.xlu1 %50 }
  0xfa   :  { %v52_v11 = vsel %vm49_vm2, %v51_v10, %v48_v9 }
  0xfb   :  { %53 = vrot.lane.b32.xlu1 %v52_v11, %s782_s2 }
  0xff   :  { %66 = vrot.lane.b32.xlu1 %v841_v12, %s784_s20 }
 0x16d   :  { %v54_v14 = vpop.permute.xlu1 %53 }
 0x16e   :  { %v55_v15 = vsel %vm49_vm2, %v54_v14, %v48_v9 }
 0x16f   :  { %61 = vrot.lane.b32.xlu1 %v55_v15, %s786_s21  ;;  %57 = vrot.lane.b32.xlu0 %v55_v15, %s787_s22 }
 0x171   :  { %v67_v16 = vpop.permute.xlu1 %66 }
 0x172   :  { %701 = vmatmul.mubr.msk.f32.vlgmr.msra.gmra.mxu1 %vm68_vm3, %v67_v16 }
 0x173   :  { %220 = vrot.lane.b32.xlu0 %v841_v12, %s788_s1  ;;  %705 = vmatprep.mubr.msk.f32.mxu1 %vm783_vm1, %v781_v3 }
 0x174   :  { %299 = vperm.xlu1 %755, %v19_v0  }
 0x1e1   :  { %v58_v22 = vpop.permute.xlu0 %57  ;;  %v62_v23 = vpop.permute.xlu1 %61 }
 0x1e2   :  { %v60_v24 = vsel %vm851_vm4, %v58_v22, 0.0  ;;  %v64_v25 = vsel %vm855_vm5, %v62_v23, 0.0 }
 0x1e3   :  { %704 = vmatpush3.msk.msra.mxu1 %vm71_vm0, %v60_v24  ;;  %709 = vmatpush3.msk.msra.mxu0 %vm71_vm0, %v64_v25 }
 0x1e4   :  { %706 = vmatmul.mubr.msk.f32.vlgmr.msra.gmra.mxu1 %vm68_vm3, %v841_v12  ;;  %713 = vmatprep.subr.mxu1 %v781_v3 }
 0x1e5   :  { %v221_v26 = vpop.permute.xlu0 %220  ;;  %718 = vmatprep.subr.mxu0 %v781_v3  ;;  %715 = vmatprep.mubr.msk.f32.mxu1 %vm783_vm1, %v781_v3 }
 0x1e6   :  { %711 = vmatmul.mubr.msk.f32.vlgmr.msra.gmra.mxu0 %vm68_vm3, %v221_v26 }
 0x1e7   :  { %720 = vmatprep.mubr.msk.f32.mxu0 %vm783_vm1, %v781_v3 }
 0x1ef   :  { %v300_v31 = vpop.permute.xlu1 %299 }
 0x232   :  { %v141_v27 = vpop.f32.mrf.mxu1 }
 0x234   :  { %v702_v28 = vpop.f32.mrf.mxu1 }
 0x2a4   :  { %v216_v29 = vpop.f32.mrf.mxu1 }
 0x2a5   :  { %v217_v30 = vadd.f32 %v216_v29, %v141_v27 }
 0x2a6   :  { %v707_v32 = vpop.f32.mrf.mxu1  ;;  %v293_v33 = vpop.f32.mrf.mxu0 }
 0x2a7   :  { %v297_v34 = vadd.f32 %v293_v33, %v217_v30 }
 0x2a8   :  { %v712_v35 = vpop.f32.mrf.mxu0 }
 0x2a9   :  { %v302_v36 = vadd.f32 %v300_v31, %v297_v34 }
 0x2ab   :  { %v303_v37 = vmax.f32 %v302_v36, 0.0 }
 0x2ad   :  { %304 = vrot.lane.b32.xlu0 %v303_v37, %s782_s2  ;;  %714 = vmatpush3.msk.msra.mxu1 %vm71_vm0, %v303_v37 }
 0x2ae   :  { %723 = vmatprep.subr.mxu1 %v781_v3 }
 0x31f   :  { %v305_v38 = vpop.permute.xlu0 %304 }
 0x320   :  { %v306_v39 = vsel %vm49_vm2, %v305_v38, %v303_v37 }
 0x321   :  { %307 = vrot.lane.b32.xlu1 %v306_v39, %s782_s2 }
 0x325   :  { %319 = vrot.lane.b32.xlu1 %v841_v12, %s789_s23 }
 0x329   :  { %396 = vrot.lane.b32.xlu1 %v841_v12, %s790_s24 }
 0x393   :  { %v308_v40 = vpop.permute.xlu1 %307 }
 0x394   :  { %v309_v41 = vsel %vm49_vm2, %v308_v40, %v303_v37 }
 0x395   :  { %311 = vrot.lane.b32.xlu0 %v309_v41, %s787_s22 }
 0x397   :  { %v320_v42 = vpop.permute.xlu1 %319 }
 0x398   :  { %716 = vmatmul.mubr.msk.f32.vlgmr.msra.gmra.mxu1 %vm68_vm3, %v320_v42 }
 0x399   :  { %315 = vrot.lane.b32.xlu0 %v309_v41, %s786_s21  ;;  %725 = vmatprep.mubr.msk.f32.mxu1 %vm783_vm1, %v781_v3 }
 0x39b   :  { %v397_v44 = vpop.permute.xlu1 %396 }
 0x39d   :  { %473 = vrot.lane.b32.xlu0 %v841_v12, %s791_s25 }
 0x3a1   :  { %562 = vrot.lane.b32.xlu0 %v826_v5, %s782_s2 }
 0x407   :  { %v312_v43 = vpop.permute.xlu0 %311 }
 0x408   :  { %v314_v45 = vsel %vm851_vm4, %v312_v43, 0.0 }
 0x409   :  { %719 = vmatpush3.msk.msra.mxu0 %vm71_vm0, %v314_v45 }
 0x40a   :  { %721 = vmatmul.mubr.msk.f32.vlgmr.msra.gmra.mxu0 %vm68_vm3, %v397_v44  ;;  %728 = vmatprep.subr.mxu0 %v781_v3 }
 0x40b   :  { %v316_v46 = vpop.permute.xlu0 %315  ;;  %736 = vmatprep.mubr.msk.f32.mxu0 %vm783_vm1, %v781_v3  ;;  %729 = vmatpush3.msra.mxu0 %v577_v61 }
 0x40c   :  { %v318_v47 = vsel %vm855_vm5, %v316_v46, 0.0  ;;  %730 = vmatprep.subr.mxu0 %v781_v3 }
 0x40d   :  { %724 = vmatpush3.msk.msra.mxu1 %vm71_vm0, %v318_v47  ;;  %731 = vmatpush3.msra.mxu0 %v576_v62 }
 0x40e   :  { %732 = vmatprep.subr.mxu0 %v781_v3 }
 0x40f   :  { %v474_v48 = vpop.permute.xlu0 %473  ;;  %733 = vmatpush3.msra.mxu0 %v575_v1 }
 0x410   :  { %726 = vmatmul.mubr.msk.f32.vlgmr.msra.gmra.mxu1 %vm68_vm3, %v474_v48  ;;  %734 = vmatprep.subr.mxu0 %v781_v3 }
 0x411   :  { %735 = vmatpush3.msra.mxu0 %v574_v2 }
 0x413   :  { %v563_v51 = vpop.permute.xlu0 %562 }
 0x414   :  { %v564_v52 = vsel %vm49_vm2, %v563_v51, %v826_v5 }
 0x415   :  { %565 = vrot.lane.b32.xlu0 %v564_v52, %s782_s2 }
 0x458   :  { %v392_v49 = vpop.f32.mrf.mxu1 }
 0x45a   :  { %v717_v50 = vpop.f32.mrf.mxu1 }
 0x487   :  { %v566_v59 = vpop.permute.xlu0 %565 }
 0x488   :  { %v567_v60 = vsel %vm49_vm2, %v566_v59, %v826_v5 }
 0x489   :  { %569 = vrot.lane.b32.xlu0 %v567_v60, %s786_s21 }
 0x4ca   :  { %v469_v53 = vpop.f32.mrf.mxu0 }
 0x4cb   :  { %v470_v55 = vadd.f32 %v469_v53, %v392_v49 }
 0x4cc   :  { %v722_v54 = vpop.f32.mrf.mxu0 }
 0x4d0   :  { %v546_v56 = vpop.f32.mrf.mxu1 }
 0x4d1   :  { %v550_v57 = vadd.f32 %v546_v56, %v470_v55 }
 0x4d2   :  { %v727_v58 = vpop.f32.mrf.mxu1 }
 0x4d3   :  { %551 = vrot.lane.b32.xlu1 %v550_v57, %s782_s2 }
 0x4fb   :  { %v570_v7 = vpop.permute.xlu0 %569 }
 0x4fc   :  { %v572_v8 = vmax.f32 %v826_v5, %v570_v7 }
 0x545   :  { %v552_v63 = vpop.permute.xlu1 %551 }
 0x546   :  { %v553_v0 = vsel %vm49_vm2, %v552_v63, %v550_v57 }
 0x547   :  { %554 = vrot.lane.b32.xlu1 %v553_v0, %s782_s2 }
 0x5b9   :  { %v555_v4 = vpop.permute.xlu1 %554 }
 0x5ba   :  { %v556_v6 = vsel %vm49_vm2, %v555_v4, %v550_v57 }
 0x5bb   :  { %558 = vrot.lane.b32.xlu1 %v556_v6, %s786_s21 }
 0x62d   :  { %v559_v9 = vpop.permute.xlu1 %558 }
 0x62e   :  { %v561_v10 = vmax.f32 %v550_v57, %v559_v9 }
 0x630   :  { %v573_v11 = vadd.f32 %v572_v8, %v561_v10 }
 0x632   :  { %737 = vmatmul.mubr.msk.f32.vlgmr.msra.gmra.mxu0 %vm578_vm6, %v573_v11 }
 0x6f2   :  { %v648_v3 = vpop.f32.mrf.mxu0 }
 0x6f3   :  { %653 = vst.msk [vmem:[#allocation2] sm:$0xf] %vm652_vm7, %v648_v3 }
 0x6f4   :  { %v738_v12 = vpop.f32.mrf.mxu0 }
 0x6f5   :  { %768 = shalt.err (!%p765_p4)
}
 0x6f6   :  { %663 = dma.vmem_to_hbm [thread:$0]  %s661_s9, 64, %s935_s4, [#allocation3]  }
 0x6f7   :  { %777 = dma.done.wait [#allocation3], 64  }
 0x6f8   :  { %778 = vsyncadd [#allocation3], 4294967232 }
 0x6f9   :  { %667 = vsyncpa [#allocation3], 1 }

</bundles_post_ra>
